<compile_context>
chip_gen: v6e
topology: v6e:2x2x1
jax: 0.10.0
libtpu: 0.0.40
codegen_flags: <defaults>
</compile_context>

<pallas_src>
import numpy as np
import jax
import jax.numpy as jnp
from jax.experimental import pallas as pl
from jax.experimental.pallas import tpu as pltpu


def _make_kernel(C1, C2, B, HW):
    """One grid step processes B images; everything is lane-dense (spatial in lanes)."""

    def kernel(x_ref, p_ref, w1_ref, b1_ref, w2_ref, b2_ref, o_ref):
        # x_ref : (9*Cin, B*HW)  conv1 im2col, rows = (tap, cin), cols = (image, y, x)
        # p_ref : (B*HW, 9*B)    pooling masks (1/HW folded in), cols = (tap, image)
        # w1_ref: (C1, 9*Cin)
        # b1_ref: (C1, 1)
        # w2_ref: (C2, 9*C1)     cols ordered (tap, c1)
        # b2_ref: (C2, 1)
        # o_ref : (1, C2, B)

        # ---- conv1 (+bias, ReLU): a single K = 9*Cin matmul, output (C1, B*HW) ----
        h1 = jnp.dot(w1_ref[...], x_ref[...], preferred_element_type=jnp.float32)
        h1 = jnp.maximum(h1 + b1_ref[...], 0.0)

        # ---- fused conv2 + global average pool ------------------------------------
        # a[c, tap*B + b] = mean of zero-padded h1[b, c] over the tap-shifted window.
        a = jnp.dot(h1, p_ref[...], preferred_element_type=jnp.float32)   # (C1, 9*B)

        acc = jnp.zeros((C2, B), jnp.float32)
        for k in range(9):                       # static unroll: 9 tiny (C2,C1)@(C1,B) dots
            acc = acc + jnp.dot(w2_ref[:, k * C1:(k + 1) * C1],
                                a[:, k * B:(k + 1) * B],
                                preferred_element_type=jnp.float32)
        o_ref[0] = acc + b2_ref[...]             # (C2, B)

    return kernel


def _pool_masks(H, W):
    """(H*W, 9) masks: mask[p, tap] weights (by 1/HW) the unpadded positions that fall
    inside the 3x3-tap-shifted HxW window of the zero-padded map (exact fusion)."""
    ys, xs = np.arange(H), np.arange(W)
    row_ok = [ys < H - 1, np.ones(H, bool), ys >= 1]   # dy = 0, 1, 2
    col_ok = [xs < W - 1, np.ones(W, bool), xs >= 1]   # dx = 0, 1, 2
    mask = np.zeros((H * W, 9), np.float32)
    for dy in range(3):
        for dx in range(3):
            m2 = np.outer(row_ok[dy], col_ok[dx]).astype(np.float32) / float(H * W)
            mask[:, dy * 3 + dx] = m2.reshape(-1)
    return mask


def flow_feature_cnn(x_nchw, w1, b1, w2, b2):
    """Forward pass of FlowFeatureCNN.

    x_nchw : (N, Cin, H, W) float32
    w1     : (C1, Cin, 3, 3) torch Conv2d layout, b1: (C1,)
    w2     : (C2, C1, 3, 3),                      b2: (C2,)
    returns: (N, C2)
    """
    N, Cin, H, W = x_nchw.shape
    C1, C2 = w1.shape[0], w2.shape[0]
    HW = H * W

    # ---- batch blocking: 2 grid steps when possible (one per v7x TensorCore),
    # several images per step, capped so the im2col block (and the B^2-sized mask
    # matrix) stay comfortably inside VMEM.
    max_b = max(1, min(16, (1 << 21) // (9 * Cin * HW * 4)))
    G = 2 if N >= 2 else 1
    B = min(-(-N // G), max_b)
    G = -(-N // B)
    if G > 1 and (B * HW) % 128 != 0:
        # fall back to a single full-array block (sidesteps lane-divisibility rule)
        G, B = 1, N
    Npad = G * B

    x = x_nchw.astype(jnp.float32)
    if Npad != N:
        x = jnp.pad(x, ((0, Npad - N), (0, 0), (0, 0), (0, 0)))

    # ---- conv1 im2col in the wrapper (layout plumbing, not compute):
    # (9*Cin, Npad*HW), rows ordered (tap, cin), columns ordered (image, y, x).
    xp = jnp.pad(x, ((0, 0), (0, 0), (1, 1), (1, 1)))
    patches = [xp[:, :, dy:dy + H, dx:dx + W]
               for dy in range(3) for dx in range(3)]          # 9 x (Npad, Cin, H, W)
    xcol = jnp.stack(patches, axis=0)                          # (9, Npad, Cin, H, W)
    xcol = jnp.transpose(xcol, (0, 2, 1, 3, 4)).reshape(9 * Cin, Npad * HW)

    # ---- weights in matmul-friendly layouts ----
    w1r = jnp.transpose(w1, (0, 2, 3, 1)).reshape(C1, 9 * Cin).astype(jnp.float32)
    w2m = jnp.transpose(w2, (0, 2, 3, 1)).reshape(C2, 9 * C1).astype(jnp.float32)
    b1c = b1.reshape(C1, 1).astype(jnp.float32)
    b2c = b2.reshape(C2, 1).astype(jnp.float32)

    # ---- pooling-mask matrix, block-diagonal over the B images of one grid step:
    # pbig[b*HW + p, tap*B + b] = mask[p, tap]
    mask = _pool_masks(H, W)
    pbig_np = np.zeros((B * HW, 9 * B), np.float32)
    for b in range(B):
        for t in range(9):
            pbig_np[b * HW:(b + 1) * HW, t * B + b] = mask[:, t]
    pbig = jnp.asarray(pbig_np)

    out = pl.pallas_call(
        _make_kernel(C1, C2, B, HW),
        out_shape=jax.ShapeDtypeStruct((G, C2, B), jnp.float32),
        grid_spec=pltpu.PrefetchScalarGridSpec(
            num_scalar_prefetch=0,
            grid=(G,),
            in_specs=[
                pl.BlockSpec((9 * Cin, B * HW), lambda g: (0, g)),   # im2col slab
                pl.BlockSpec((B * HW, 9 * B), lambda g: (0, 0)),     # pooling masks
                pl.BlockSpec((C1, 9 * Cin), lambda g: (0, 0)),       # w1
                pl.BlockSpec((C1, 1), lambda g: (0, 0)),             # b1
                pl.BlockSpec((C2, 9 * C1), lambda g: (0, 0)),        # w2
                pl.BlockSpec((C2, 1), lambda g: (0, 0)),             # b2
            ],
            out_specs=pl.BlockSpec((1, C2, B), lambda g: (g, 0, 0)),
        ),
        compiler_params=pltpu.CompilerParams(
            dimension_semantics=("parallel",)),
    )(xcol, pbig, w1r, b1c, w2m, b2c)

    # (G, C2, B) -> (Npad, C2) -> (N, C2)   (layout plumbing in the wrapper)
    return jnp.transpose(out, (0, 2, 1)).reshape(Npad, C2)[:N]


def flow_feature_cnn_reference(x_nchw, w1, b1, w2, b2):
    """Pure-JAX reference (XLA convs) for correctness checking."""
    x = jnp.transpose(x_nchw, (0, 2, 3, 1)).astype(jnp.float32)
    w1h = jnp.transpose(w1, (2, 3, 1, 0)).astype(jnp.float32)  # HWIO
    w2h = jnp.transpose(w2, (2, 3, 1, 0)).astype(jnp.float32)
    y = jax.lax.conv_general_dilated(
        x, w1h, (1, 1), 'SAME',
        dimension_numbers=('NHWC', 'HWIO', 'NHWC')) + b1
    y = jnp.maximum(y, 0.0)
    y = jax.lax.conv_general_dilated(
        y, w2h, (1, 1), 'SAME',
        dimension_numbers=('NHWC', 'HWIO', 'NHWC')) + b2
    return jnp.mean(y, axis=(1, 2))


if __name__ == "__main__":
    # FlowFeatureCNN(input_channels=4, embed_dim=64) at small spatial size.
    N, Cin, H, W = 2, 4, 16, 16
    C1, C2 = 16, 64  # hidden channels / embed_dim

    key = jax.random.PRNGKey(0)
    kx, kw1, kb1, kw2, kb2 = jax.random.split(key, 5)

    x = jax.random.normal(kx, (N, Cin, H, W), dtype=jnp.float32)
    w1 = jax.random.normal(kw1, (C1, Cin, 3, 3), jnp.float32) * (2.0 / (Cin * 9)) ** 0.5
    b1 = jax.random.normal(kb1, (C1,), jnp.float32) * 0.01
    w2 = jax.random.normal(kw2, (C2, C1, 3, 3), jnp.float32) * (2.0 / (C1 * 9)) ** 0.5
    b2 = jax.random.normal(kb2, (C2,), jnp.float32) * 0.01

    out = jax.block_until_ready(flow_feature_cnn(x, w1, b1, w2, b2))
    ref = jax.block_until_ready(flow_feature_cnn_reference(x, w1, b1, w2, b2))

    assert out.shape == (N, C2), out.shape
    max_err = float(jnp.max(jnp.abs(out - ref)))
    assert jnp.allclose(out, ref, atol=1e-3, rtol=1e-3), max_err

    print("KERNEL_OK")
</pallas_src>

<mosaic_0001>
module attributes {stable_mosaic.version = 11 : i64} {
  func.func @kernel(%arg0: i32, %arg1: memref<36x256xf32, #tpu.memory_space<vmem>>, %arg2: memref<256x9xf32, #tpu.memory_space<vmem>>, %arg3: memref<16x36xf32, #tpu.memory_space<vmem>>, %arg4: memref<16x1xf32, #tpu.memory_space<vmem>>, %arg5: memref<64x144xf32, #tpu.memory_space<vmem>>, %arg6: memref<64x1xf32, #tpu.memory_space<vmem>>, %arg7: memref<1x64x1xf32, #tpu.memory_space<vmem>>) attributes {dimension_semantics = [#tpu.dimension_semantics<parallel>], iteration_bounds = array<i64: 2>, scalar_prefetch = 0 : i64, scratch_operands = 0 : i64, tpu.core_type = #tpu.core_type<tc>, window_params = [{transform_indices = @transform_0, window_bounds = array<i64: 36, 256>}, {pipeline_mode = #tpu.pipeline_mode<synchronous>, transform_indices = @transform_1, window_bounds = array<i64: 256, 9>}, {pipeline_mode = #tpu.pipeline_mode<synchronous>, transform_indices = @transform_2, window_bounds = array<i64: 16, 36>}, {pipeline_mode = #tpu.pipeline_mode<synchronous>, transform_indices = @transform_3, window_bounds = array<i64: 16, 1>}, {pipeline_mode = #tpu.pipeline_mode<synchronous>, transform_indices = @transform_4, window_bounds = array<i64: 64, 144>}, {pipeline_mode = #tpu.pipeline_mode<synchronous>, transform_indices = @transform_5, window_bounds = array<i64: 64, 1>}, {transform_indices = @transform_6, window_bounds = array<i64: 1, 64, 1>}]} {
    %c0 = arith.constant 0 : index
    %c0_0 = arith.constant 0 : index
    %0 = vector.load %arg3[%c0, %c0_0] : memref<16x36xf32, #tpu.memory_space<vmem>>, vector<16x36xf32>
    %c0_1 = arith.constant 0 : index
    %c0_2 = arith.constant 0 : index
    %1 = vector.load %arg1[%c0_1, %c0_2] : memref<36x256xf32, #tpu.memory_space<vmem>>, vector<36x256xf32>
    %cst = arith.constant dense<0.000000e+00> : vector<16x256xf32>
    %2 = tpu.matmul %0, %1, %cst {dimension_numbers = #tpu.dot_dimension_numbers<[1], [0], [0], [1], [0, 0, 1, 1], [], []>} : vector<16x36xf32>, vector<36x256xf32>, vector<16x256xf32> -> vector<16x256xf32>
    %c0_3 = arith.constant 0 : index
    %c0_4 = arith.constant 0 : index
    %3 = vector.load %arg4[%c0_3, %c0_4] : memref<16x1xf32, #tpu.memory_space<vmem>>, vector<16x1xf32>
    %4 = vector.broadcast %3 : vector<16x1xf32> to vector<16x256xf32>
    %5 = arith.addf %2, %4 : vector<16x256xf32>
    %cst_5 = arith.constant 0.000000e+00 : f32
    %6 = vector.broadcast %cst_5 : f32 to vector<16x256xf32>
    %7 = arith.maximumf %5, %6 : vector<16x256xf32>
    %c0_6 = arith.constant 0 : index
    %c0_7 = arith.constant 0 : index
    %8 = vector.load %arg2[%c0_6, %c0_7] : memref<256x9xf32, #tpu.memory_space<vmem>>, vector<256x9xf32>
    %cst_8 = arith.constant dense<0.000000e+00> : vector<16x9xf32>
    %9 = tpu.matmul %7, %8, %cst_8 {dimension_numbers = #tpu.dot_dimension_numbers<[1], [0], [0], [1], [0, 0, 1, 1], [], []>} : vector<16x256xf32>, vector<256x9xf32>, vector<16x9xf32> -> vector<16x9xf32>
    %cst_9 = arith.constant 0.000000e+00 : f32
    %10 = vector.broadcast %cst_9 : f32 to vector<64x1xf32>
    %c0_10 = arith.constant 0 : index
    %c0_11 = arith.constant 0 : index
    %11 = vector.load %arg5[%c0_10, %c0_11] : memref<64x144xf32, #tpu.memory_space<vmem>>, vector<64x16xf32>
    %12 = vector.extract_strided_slice %9 {offsets = [0, 0], sizes = [16, 1], strides = [1, 1]} : vector<16x9xf32> to vector<16x1xf32>
    %cst_12 = arith.constant dense<0.000000e+00> : vector<64x1xf32>
    %13 = tpu.matmul %11, %12, %cst_12 {dimension_numbers = #tpu.dot_dimension_numbers<[1], [0], [0], [1], [0, 0, 1, 1], [], []>} : vector<64x16xf32>, vector<16x1xf32>, vector<64x1xf32> -> vector<64x1xf32>
    %14 = arith.addf %10, %13 : vector<64x1xf32>
    %c0_13 = arith.constant 0 : index
    %c16 = arith.constant 16 : index
    %15 = vector.load %arg5[%c0_13, %c16] : memref<64x144xf32, #tpu.memory_space<vmem>>, vector<64x16xf32>
    %16 = vector.extract_strided_slice %9 {offsets = [0, 1], sizes = [16, 1], strides = [1, 1]} : vector<16x9xf32> to vector<16x1xf32>
    %cst_14 = arith.constant dense<0.000000e+00> : vector<64x1xf32>
    %17 = tpu.matmul %15, %16, %cst_14 {dimension_numbers = #tpu.dot_dimension_numbers<[1], [0], [0], [1], [0, 0, 1, 1], [], []>} : vector<64x16xf32>, vector<16x1xf32>, vector<64x1xf32> -> vector<64x1xf32>
    %18 = arith.addf %14, %17 : vector<64x1xf32>
    %c0_15 = arith.constant 0 : index
    %c32 = arith.constant 32 : index
    %19 = vector.load %arg5[%c0_15, %c32] : memref<64x144xf32, #tpu.memory_space<vmem>>, vector<64x16xf32>
    %20 = vector.extract_strided_slice %9 {offsets = [0, 2], sizes = [16, 1], strides = [1, 1]} : vector<16x9xf32> to vector<16x1xf32>
    %cst_16 = arith.constant dense<0.000000e+00> : vector<64x1xf32>
    %21 = tpu.matmul %19, %20, %cst_16 {dimension_numbers = #tpu.dot_dimension_numbers<[1], [0], [0], [1], [0, 0, 1, 1], [], []>} : vector<64x16xf32>, vector<16x1xf32>, vector<64x1xf32> -> vector<64x1xf32>
    %22 = arith.addf %18, %21 : vector<64x1xf32>
    %c0_17 = arith.constant 0 : index
    %c48 = arith.constant 48 : index
    %23 = vector.load %arg5[%c0_17, %c48] : memref<64x144xf32, #tpu.memory_space<vmem>>, vector<64x16xf32>
    %24 = vector.extract_strided_slice %9 {offsets = [0, 3], sizes = [16, 1], strides = [1, 1]} : vector<16x9xf32> to vector<16x1xf32>
    %cst_18 = arith.constant dense<0.000000e+00> : vector<64x1xf32>
    %25 = tpu.matmul %23, %24, %cst_18 {dimension_numbers = #tpu.dot_dimension_numbers<[1], [0], [0], [1], [0, 0, 1, 1], [], []>} : vector<64x16xf32>, vector<16x1xf32>, vector<64x1xf32> -> vector<64x1xf32>
    %26 = arith.addf %22, %25 : vector<64x1xf32>
    %c0_19 = arith.constant 0 : index
    %c64 = arith.constant 64 : index
    %27 = vector.load %arg5[%c0_19, %c64] : memref<64x144xf32, #tpu.memory_space<vmem>>, vector<64x16xf32>
    %28 = vector.extract_strided_slice %9 {offsets = [0, 4], sizes = [16, 1], strides = [1, 1]} : vector<16x9xf32> to vector<16x1xf32>
    %cst_20 = arith.constant dense<0.000000e+00> : vector<64x1xf32>
    %29 = tpu.matmul %27, %28, %cst_20 {dimension_numbers = #tpu.dot_dimension_numbers<[1], [0], [0], [1], [0, 0, 1, 1], [], []>} : vector<64x16xf32>, vector<16x1xf32>, vector<64x1xf32> -> vector<64x1xf32>
    %30 = arith.addf %26, %29 : vector<64x1xf32>
    %c0_21 = arith.constant 0 : index
    %c80 = arith.constant 80 : index
    %31 = vector.load %arg5[%c0_21, %c80] : memref<64x144xf32, #tpu.memory_space<vmem>>, vector<64x16xf32>
    %32 = vector.extract_strided_slice %9 {offsets = [0, 5], sizes = [16, 1], strides = [1, 1]} : vector<16x9xf32> to vector<16x1xf32>
    %cst_22 = arith.constant dense<0.000000e+00> : vector<64x1xf32>
    %33 = tpu.matmul %31, %32, %cst_22 {dimension_numbers = #tpu.dot_dimension_numbers<[1], [0], [0], [1], [0, 0, 1, 1], [], []>} : vector<64x16xf32>, vector<16x1xf32>, vector<64x1xf32> -> vector<64x1xf32>
    %34 = arith.addf %30, %33 : vector<64x1xf32>
    %c0_23 = arith.constant 0 : index
    %c96 = arith.constant 96 : index
    %35 = vector.load %arg5[%c0_23, %c96] : memref<64x144xf32, #tpu.memory_space<vmem>>, vector<64x16xf32>
    %36 = vector.extract_strided_slice %9 {offsets = [0, 6], sizes = [16, 1], strides = [1, 1]} : vector<16x9xf32> to vector<16x1xf32>
    %cst_24 = arith.constant dense<0.000000e+00> : vector<64x1xf32>
    %37 = tpu.matmul %35, %36, %cst_24 {dimension_numbers = #tpu.dot_dimension_numbers<[1], [0], [0], [1], [0, 0, 1, 1], [], []>} : vector<64x16xf32>, vector<16x1xf32>, vector<64x1xf32> -> vector<64x1xf32>
    %38 = arith.addf %34, %37 : vector<64x1xf32>
    %c0_25 = arith.constant 0 : index
    %c112 = arith.constant 112 : index
    %39 = vector.load %arg5[%c0_25, %c112] : memref<64x144xf32, #tpu.memory_space<vmem>>, vector<64x16xf32>
    %40 = vector.extract_strided_slice %9 {offsets = [0, 7], sizes = [16, 1], strides = [1, 1]} : vector<16x9xf32> to vector<16x1xf32>
    %cst_26 = arith.constant dense<0.000000e+00> : vector<64x1xf32>
    %41 = tpu.matmul %39, %40, %cst_26 {dimension_numbers = #tpu.dot_dimension_numbers<[1], [0], [0], [1], [0, 0, 1, 1], [], []>} : vector<64x16xf32>, vector<16x1xf32>, vector<64x1xf32> -> vector<64x1xf32>
    %42 = arith.addf %38, %41 : vector<64x1xf32>
    %c0_27 = arith.constant 0 : index
    %c128 = arith.constant 128 : index
    %43 = vector.load %arg5[%c0_27, %c128] : memref<64x144xf32, #tpu.memory_space<vmem>>, vector<64x16xf32>
    %44 = vector.extract_strided_slice %9 {offsets = [0, 8], sizes = [16, 1], strides = [1, 1]} : vector<16x9xf32> to vector<16x1xf32>
    %cst_28 = arith.constant dense<0.000000e+00> : vector<64x1xf32>
    %45 = tpu.matmul %43, %44, %cst_28 {dimension_numbers = #tpu.dot_dimension_numbers<[1], [0], [0], [1], [0, 0, 1, 1], [], []>} : vector<64x16xf32>, vector<16x1xf32>, vector<64x1xf32> -> vector<64x1xf32>
    %46 = arith.addf %42, %45 : vector<64x1xf32>
    %c0_29 = arith.constant 0 : index
    %c0_30 = arith.constant 0 : index
    %47 = vector.load %arg6[%c0_29, %c0_30] : memref<64x1xf32, #tpu.memory_space<vmem>>, vector<64x1xf32>
    %48 = arith.addf %46, %47 : vector<64x1xf32>
    %c0_31 = arith.constant 0 : index
    %c0_32 = arith.constant 0 : index
    %c0_33 = arith.constant 0 : index
    %49 = vector.load %arg7[%c0_31, %c0_32, %c0_33] : memref<1x64x1xf32, #tpu.memory_space<vmem>>, vector<1x64x1xf32>
    %50 = vector.shape_cast %49 : vector<1x64x1xf32> to vector<64x1xf32>
    %51 = vector.shape_cast %48 : vector<64x1xf32> to vector<1x64x1xf32>
    tpu.vector_store %arg7[%c0_31, %c0_32, %c0_33], %51 {strides = array<i32>} : memref<1x64x1xf32, #tpu.memory_space<vmem>>, vector<1x64x1xf32>,
    return
  }
  func.func @transform_0(%arg0: i32) -> (i32, i32) {
    %c0_i32 = arith.constant 0 : i32
    %c0_i32_0 = arith.constant 0 : i32
    return %c0_i32, %arg0 : i32, i32
  }
  func.func @transform_1(%arg0: i32) -> (i32, i32) {
    %c0_i32 = arith.constant 0 : i32
    %c0_i32_0 = arith.constant 0 : i32
    %c0_i32_1 = arith.constant 0 : i32
    return %c0_i32, %c0_i32_0 : i32, i32
  }
  func.func @transform_2(%arg0: i32) -> (i32, i32) {
    %c0_i32 = arith.constant 0 : i32
    %c0_i32_0 = arith.constant 0 : i32
    %c0_i32_1 = arith.constant 0 : i32
    return %c0_i32, %c0_i32_0 : i32, i32
  }
  func.func @transform_3(%arg0: i32) -> (i32, i32) {
    %c0_i32 = arith.constant 0 : i32
    %c0_i32_0 = arith.constant 0 : i32
    %c0_i32_1 = arith.constant 0 : i32
    return %c0_i32, %c0_i32_0 : i32, i32
  }
  func.func @transform_4(%arg0: i32) -> (i32, i32) {
    %c0_i32 = arith.constant 0 : i32
    %c0_i32_0 = arith.constant 0 : i32
    %c0_i32_1 = arith.constant 0 : i32
    return %c0_i32, %c0_i32_0 : i32, i32
  }
  func.func @transform_5(%arg0: i32) -> (i32, i32) {
    %c0_i32 = arith.constant 0 : i32
    %c0_i32_0 = arith.constant 0 : i32
    %c0_i32_1 = arith.constant 0 : i32
    return %c0_i32, %c0_i32_0 : i32, i32
  }
  func.func @transform_6(%arg0: i32) -> (i32, i32, i32) {
    %c0_i32 = arith.constant 0 : i32
    %c0_i32_0 = arith.constant 0 : i32
    %c0_i32_1 = arith.constant 0 : i32
    return %arg0, %c0_i32, %c0_i32_0 : i32, i32, i32
  }
}

</mosaic_0001>

<bundles_post_ra>
// kernel: tpu_custom_call.1
= control target key start
LH: loop header
LB: loop body
LE: loop exit
PB: predicated region body
PF: predicated region fallthrough
CT: control target
= control target key end

     0   :  { %s2424_s21 = smov 0   ;;  %s2426_s22 = smov 0   ;;  %s3008_s0 = inlined_call_operand.vmem [shape: f32[36,512], index: 0, kind: input, shape index: {}]   ;;  %s3009_s1 = inlined_call_operand.vmem [shape: f32[256,9], index: 1, kind: input, shape index: {}]   ;;  %s3010_s2 = inlined_call_operand.vmem [shape: f32[16,36], index: 2, kind: input, shape index: {}]   ;;  %s3011_s3 = inlined_call_operand.vmem [shape: f32[16,1], index: 3, kind: input, shape index: {}]   ;;  %s3012_s4 = inlined_call_operand.vmem [shape: f32[64,144], index: 4, kind: input, shape index: {}]   ;;  %s3013_s5 = inlined_call_operand.vmem [shape: f32[64,1], index: 5, kind: input, shape index: {}]   ;;  %s3014_s6 = inlined_call_operand.vmem [shape: f32[2,64,1], index: 6, kind: output, shape index: {}]  }
   0x1   :  { %s2428_s23 = smov 0  }
   0x2 LB: > { %s1943_s24 = sadd.s32 4294967295, %s2370_s23   ;;  %s2441_s25 = sadd.s32 1, %s2370_s23   ;;  %s2370_s23 = sphi %s2428_s23, %s3018_s23   ;;  %s2366_s22 = sphi %s2426_s22, %s3017_s22   ;;  %s2362_s21 = sphi %s2424_s21, %s3016_s21  }
   0x3   : > { %s20_s26 = ssub.s32 %s2370_s23, %s2441_s25  ;;  %s23_s27 = sadd.s32 1, %s2366_s22 }
   0x4   : > { %p21_p0 = scmp.eq.s32.totalorder %s20_s26, 0  ;;  %p30_p1 = scmp.ne.s32.totalorder %s2366_s22, %s2362_s21 }
   0x5   : > { %p31_p2 = scmp.eq.s32.totalorder %s2370_s23, 0  ;;  %p1946_p4 = scmp.ge.s32.totalorder %s2370_s23, 2 }
   0x6   : > { %s2450_s28 = scalar_select %p21_p0, %s2366_s22, %s23_s27  }
   0x7   : > { %p32_p3 = por %p31_p2, %p30_p1  ;;  %202 = sbr.rel (%p1946_p4) target bundleno = 21 (0x15), region = 36 }
   0xc   : > { %205 = sbr.rel (!%p32_p3) target bundleno = 21 (0x15), region = 40  ;;  %s207_s29 = sand.u32 (%p32_p3), 1, %s2366_s22  }
   0xd   : > { %s2030_s30 = sshll.u32 (%p32_p3), %s2370_s23, 4  ;;  %s2304_s7 = smul.u32 (%p32_p3), 80, %s207_s29 }
   0xe   : > { %s212_s10 = scalar_lea.vmem (%p32_p3), %s3008_s0, %s2030_s30 }
   0xf   : > { %v225_v0 = vld [vmem:[%s212_s10] sm:$0xff] (%p32_p3)  ;;  %v227_v1 = vld [vmem:[%s212_s10 + $0x8] sm:$0xff] (%p32_p3)  ;;  %s209_s11 = scalar_lea.vmem (%p32_p3), [#allocation2], %s2304_s7 }
  0x10   : > { %v229_v2 = vld [vmem:[%s212_s10 + $0x20] sm:$0xff] (%p32_p3)  ;;  %v231_v3 = vld [vmem:[%s212_s10 + $0x28] sm:$0xff] (%p32_p3)  ;;  %226 = vst [vmem:[%s209_s11] sm:$0xff] (%p32_p3), %v225_v0  ;;  %228 = vst [vmem:[%s209_s11 + $0x8] sm:$0xff] (%p32_p3), %v227_v1 }
  0x11   : > { %v233_v4 = vld [vmem:[%s212_s10 + $0x40] sm:$0xff]  ;;  %v235_v5 = vld [vmem:[%s212_s10 + $0x48] sm:$0xff]  ;;  %230 = vst [vmem:[%s209_s11 + $0x10] sm:$0xff] %v229_v2  ;;  %232 = vst [vmem:[%s209_s11 + $0x18] sm:$0xff] %v231_v3 }
  0x12   : > { %234 = vst [vmem:[%s209_s11 + $0x20] sm:$0xff] %v233_v4  ;;  %236 = vst [vmem:[%s209_s11 + $0x28] sm:$0xff] %v235_v5  ;;  %v237_v6 = vld [vmem:[%s212_s10 + $0x60] sm:$0xff]  ;;  %v239_v7 = vld [vmem:[%s212_s10 + $0x68] sm:$0xff] }
  0x13   : > { %v241_v8 = vld [vmem:[%s212_s10 + $0x80] sm:$0xff]  ;;  %238 = vst [vmem:[%s209_s11 + $0x30] sm:$0xff] %v237_v6  ;;  %240 = vst [vmem:[%s209_s11 + $0x38] sm:$0xff] %v239_v7  ;;  %v243_v9 = vld [vmem:[%s212_s10 + $0x88] sm:$0xff] }
  0x14   : > { %242 = vst [vmem:[%s209_s11 + $0x40] sm:$0xff] %v241_v8  ;;  %244 = vst [vmem:[%s209_s11 + $0x48] sm:$0xff] %v243_v9 }
  0x15 PF: > { %p1949_p5 = scmp.ge.s32.totalorder %s2370_s23, 1  ;;  %p249_p6 = scmp.lt.s32.totalorder %s2370_s23, 3 }
  0x17   : > { %p250_p7 = pnand %p1949_p5, %p249_p6 }
  0x18   : > { %s256_s12 = sand.u32 (!%p250_p7), 1, %s2362_s21   ;;  %s2374_s14 = smov (!%p250_p7), 112  }
  0x19   : > { %253 = sbr.rel (%p250_p7) target bundleno = 856 (0x358), region = 63  ;;  %s2375_s10 = smov (!%p250_p7), 96  }
  0x1a   : > { %s2305_s13 = smul.u32 (!%p250_p7), 80, %s256_s12  ;;  %s2377_s11 = smov (!%p250_p7), 64  }
  0x1b   : > { %s2378_s12 = smov (!%p250_p7), 48   ;;  %s2381_s15 = smov (!%p250_p7), 126  }
  0x1c   : > { %s258_s9 = scalar_lea.vmem (!%p250_p7), [#allocation2], %s2305_s13  ;;  %s2380_s13 = smov (!%p250_p7), 127  }
  0x1d   : > { %s2382_s16 = smov (!%p250_p7), 125   ;;  %s2383_s17 = smov (!%p250_p7), 124  }
  0x1e   : > { %v2372_v10 = vmov 0.0   ;;  %v303_v11 = vld [vmem:[%s3011_s3] sm:$0xff]  ;;  %v441_v12 = vld [vmem:[%s3009_s1 + $0xf8] sm:$0xff]  ;;  %vm322_vm0 = vcmask 1043456   ;;  %v2373_v13 = vmov 0   ;;  %v440_v15 = vld [vmem:[%s3009_s1 + $0xf0] sm:$0xff] }
  0x1f   : > { %393 = vmatprep.mubr.f32.mxu0 %v2372_v10  ;;  %2347 = vset.pattern.permute.xlu0 %v2373_v13  ;;  %v425_v14 = vld [vmem:[%s3009_s1 + $0x78] sm:$0xff]  ;;  %v424_v16 = vld [vmem:[%s3009_s1 + $0x70] sm:$0xff]  ;;  %v304_v17 = vld [vmem:[%s3011_s3 + $0x8] sm:$0xff]  ;;  %vm315_vm1 = vcmask 293888   ;;  %vm557_vm2 = vcmask 130048   ;;  %s2384_s18 = smov 123  }
  0x20   : > { %2032 = vmatprep.subr.mxu1 %v441_v12  ;;  %307 = vperm.xlu0 %2347, %v303_v11   ;;  %v439_v18 = vld [vmem:[%s3009_s1 + $0xe8] sm:$0xff]  ;;  %v301_v20 = vld [vmem:[%s258_s9 + $0x40] sm:$0xf]  ;;  %v299_v22 = vld [vmem:[%s258_s9 + $0x30] sm:$0xff]  ;;  %s2385_s19 = smov 122   ;;  %s2386_s20 = smov 121  }
  0x21   : > { %2033 = vmatpush3.msra.mxu1 %v425_v14  ;;  %v302_v19 = vld [vmem:[%s258_s9 + $0x48] sm:$0xf]  ;;  %v300_v21 = vld [vmem:[%s258_s9 + $0x38] sm:$0xff]  ;;  %v438_v25 = vld [vmem:[%s3009_s1 + $0xe0] sm:$0xff]  ;;  %s2387_s21 = smov 120   ;;  %s2388_s26 = smov 16  }
  0x22   : > { %2034 = vmatprep.subr.mxu1 %v440_v15  ;;  %1952 = vmatprep.subr.msk.mxu0 %vm322_vm0, %v302_v19  ;;  %v423_v23 = vld [vmem:[%s3009_s1 + $0x68] sm:$0xff]  ;;  %v297_v26 = vld [vmem:[%s258_s9 + $0x20] sm:$0xff]  ;;  %v437_v29 = vld [vmem:[%s3009_s1 + $0xd8] sm:$0xff]  ;;  %p2923_p8 = scmp.lt.s32.totalorder %s1943_s24, 1  ;;  %vm1873_vm3 = vcmask 7168  }
  0x23   : > { %2035 = vmatpush3.msra.mxu1 %v424_v16  ;;  %1953 = vmatpush1.msk.msra.mxu0 %vm322_vm0, %v301_v20  ;;  %v298_v24 = vld [vmem:[%s258_s9 + $0x28] sm:$0xff]  ;;  %v422_v27 = vld [vmem:[%s3009_s1 + $0x60] sm:$0xff]  ;;  %v296_v28 = vld [vmem:[%s258_s9 + $0x18] sm:$0xff] }
  0x24   : > { %2036 = vmatprep.subr.mxu1 %v439_v18  ;;  %353 = vmatprep.subr.mxu0 %v300_v21  ;;  %v295_v30 = vld [vmem:[%s258_s9 + $0x10] sm:$0xff]  ;;  %v421_v31 = vld [vmem:[%s3009_s1 + $0x58] sm:$0xff]  ;;  %v293_v34 = vld [vmem:[%s258_s9] sm:$0xff]  ;;  %s3020_s24 = smov (!%p2923_p8, %s1943_s24), 1 }
  0x25   : > { %312 = vperm.xlu0 %2347, %v304_v17   ;;  %354 = vmatpush1.msra.mxu0 %v299_v22  ;;  %v294_v32 = vld [vmem:[%s258_s9 + $0x8] sm:$0xff]  ;;  %v436_v33 = vld [vmem:[%s3009_s1 + $0xd0] sm:$0xff]  ;;  %v291_v36 = vld [vmem:[%s3010_s2] sm:$0xff]  ;;  %s2376_s9 = smov 80   ;;  %s2031_s23 = sshll.u32 %s3020_s24, 6 }
  0x26   : > { %2037 = vmatpush3.msra.mxu1 %v423_v23  ;;  %355 = vmatprep.subr.mxu0 %v298_v24  ;;  %v420_v35 = vld [vmem:[%s3009_s1 + $0x50] sm:$0xff]  ;;  %v435_v37 = vld [vmem:[%s3009_s1 + $0xc8] sm:$0xff]  ;;  %v434_v39 = vld [vmem:[%s3009_s1 + $0xc0] sm:$0xff]  ;;  %s2953_s24 = scalar_lea.vmem %s3014_s6, %s2031_s23 }
  0x27   : > { %2038 = vmatprep.subr.mxu1 %v438_v25  ;;  %356 = vmatpush1.msra.mxu0 %v297_v26  ;;  %v419_v38 = vld [vmem:[%s3009_s1 + $0x48] sm:$0xff]  ;;  %v418_v40 = vld [vmem:[%s3009_s1 + $0x40] sm:$0xff]  ;;  %v433_v42 = vld [vmem:[%s3009_s1 + $0xb8] sm:$0xff] }
  0x28   : > { %2039 = vmatpush3.msra.mxu1 %v422_v27  ;;  %357 = vmatprep.subr.mxu0 %v296_v28  ;;  %v292_v41 = vld [vmem:[%s3010_s2 + $0x8] sm:$0xff]  ;;  %v417_v43 = vld [vmem:[%s3009_s1 + $0x38] sm:$0xff]  ;;  %v432_v44 = vld [vmem:[%s3009_s1 + $0xb0] sm:$0xff] }
  0x29   : > { %2040 = vmatprep.subr.mxu1 %v437_v29  ;;  %358 = vmatpush1.msra.mxu0 %v295_v30  ;;  %v416_v45 = vld [vmem:[%s3009_s1 + $0x30] sm:$0xff]  ;;  %v431_v46 = vld [vmem:[%s3009_s1 + $0xa8] sm:$0xff]  ;;  %v430_v48 = vld [vmem:[%s3009_s1 + $0xa0] sm:$0xff] }
  0x2a   : > { %2041 = vmatpush3.msra.mxu1 %v421_v31  ;;  %359 = vmatprep.subr.mxu0 %v294_v32  ;;  %v415_v47 = vld [vmem:[%s3009_s1 + $0x28] sm:$0xff]  ;;  %v414_v49 = vld [vmem:[%s3009_s1 + $0x20] sm:$0xff]  ;;  %v429_v50 = vld [vmem:[%s3009_s1 + $0x98] sm:$0xff] }
  0x2b   : > { %2042 = vmatprep.subr.mxu1 %v436_v33  ;;  %360 = vmatpush1.msra.mxu0 %v293_v34  ;;  %v413_v51 = vld [vmem:[%s3009_s1 + $0x18] sm:$0xff]  ;;  %v428_v52 = vld [vmem:[%s3009_s1 + $0x90] sm:$0xff]  ;;  %v427_v54 = vld [vmem:[%s3009_s1 + $0x88] sm:$0xff] }
  0x2c   : > { %2043 = vmatpush3.msra.mxu1 %v420_v35  ;;  %1954 = vmatmul.mubr.msk.f32.vlgmr.msra.gmra.mxu0 %vm315_vm1, %v291_v36  ;;  %v412_v53 = vld [vmem:[%s3009_s1 + $0x10] sm:$0xff]  ;;  %v411_v55 = vld [vmem:[%s3009_s1 + $0x8] sm:$0xff]  ;;  %v426_v56 = vld [vmem:[%s3009_s1 + $0x80] sm:$0xff] }
  0x2d   : > { %2044 = vmatprep.subr.mxu1 %v435_v37  ;;  %399 = vmatprep.mubr.f32.mxu0 %v2372_v10  ;;  %v410_v57 = vld [vmem:[%s3009_s1] sm:$0xff]  ;;  %v2582_v59 = vld [vmem:[%s3012_s4 + $0x10] sm:$0xff] }
  0x2e   : > { %2045 = vmatpush3.msra.mxu1 %v419_v38  ;;  %v2576_v58 = vld [vmem:[%s3012_s4] sm:$0xff]  ;;  %535 = vrot.lane.b32.xlu1 %v2582_v59, %s2374_s14  ;;  %v2593_v61 = vld [vmem:[%s3012_s4 + $0x30] sm:$0xff] }
  0x2f   : > { %2046 = vmatprep.subr.mxu1 %v434_v39  ;;  %533 = vrot.lane.b32.xlu0 %v2576_v58, %s2374_s14  ;;  %v2587_v60 = vld [vmem:[%s3012_s4 + $0x20] sm:$0xff]  ;;  %v2605_v63 = vld [vmem:[%s3012_s4 + $0x50] sm:$0xff] }
  0x30   : > { %2047 = vmatpush3.msra.mxu1 %v418_v40  ;;  %1955 = vmatmul.mubr.msk.f32.gmra.mxu0 %vm315_vm1, %v292_v41  ;;  %v2599_v62 = vld [vmem:[%s3012_s4 + $0x40] sm:$0xff]  ;;  %v2618_v1 = vld [vmem:[%s3012_s4 + $0x70] sm:$0xff] }
  0x31   : > { %2048 = vmatprep.subr.mxu1 %v433_v42  ;;  %v2611_v0 = vld [vmem:[%s3012_s4 + $0x60] sm:$0xff] }
  0x32   : > { %2049 = vmatpush3.msra.mxu1 %v417_v43  ;;  %539 = vrot.lane.b32.xlu1 %v2593_v61, %s2374_s14 }
  0x33   : > { %2050 = vmatprep.subr.mxu1 %v432_v44  ;;  %537 = vrot.lane.b32.xlu0 %v2587_v60, %s2374_s14 }
  0x34   : > { %2051 = vmatpush3.msra.mxu1 %v416_v45 }
  0x35   : > { %2052 = vmatprep.subr.mxu1 %v431_v46 }
  0x36   : > { %2053 = vmatpush3.msra.mxu1 %v415_v47  ;;  %543 = vrot.lane.b32.xlu1 %v2605_v63, %s2374_s14 }
  0x37   : > { %2054 = vmatprep.subr.mxu1 %v430_v48  ;;  %541 = vrot.lane.b32.xlu0 %v2599_v62, %s2374_s14 }
  0x38   : > { %2055 = vmatpush3.msra.mxu1 %v414_v49 }
  0x39   : > { %2056 = vmatprep.subr.mxu1 %v429_v50 }
  0x3a   : > { %2057 = vmatpush3.msra.mxu1 %v413_v51  ;;  %547 = vrot.lane.b32.xlu1 %v2618_v1, %s2374_s14 }
  0x3b   : > { %2058 = vmatprep.subr.mxu1 %v428_v52  ;;  %545 = vrot.lane.b32.xlu0 %v2611_v0, %s2374_s14  ;;  %s2379_s14 = smov 32  }
  0x3c   : > { %2059 = vmatpush3.msra.mxu1 %v412_v53 }
  0x3d   : > { %2060 = vmatprep.subr.mxu1 %v427_v54 }
  0x3e   : > { %2061 = vmatpush3.msra.mxu1 %v411_v55  ;;  %802 = vrot.lane.b32.xlu1 %v2582_v59, %s2375_s10 }
  0x3f   : > { %2062 = vmatprep.subr.mxu1 %v426_v56  ;;  %800 = vrot.lane.b32.xlu0 %v2576_v58, %s2375_s10 }
  0x40   : > { %2063 = vmatpush3.msra.mxu1 %v410_v57 }
  0x42   : > { %806 = vrot.lane.b32.xlu1 %v2593_v61, %s2375_s10 }
  0x43   : > { %804 = vrot.lane.b32.xlu0 %v2587_v60, %s2375_s10 }
  0x46   : > { %810 = vrot.lane.b32.xlu1 %v2605_v63, %s2375_s10 }
  0x47   : > { %808 = vrot.lane.b32.xlu0 %v2599_v62, %s2375_s10 }
  0x4a   : > { %812 = vrot.lane.b32.xlu1 %v2611_v0, %s2375_s10 }
  0x4b   : > { %814 = vrot.lane.b32.xlu0 %v2618_v1, %s2375_s10 }
  0x4e   : > { %951 = vrot.lane.b32.xlu1 %v2576_v58, %s2376_s9 }
  0x4f   : > { %953 = vrot.lane.b32.xlu0 %v2582_v59, %s2376_s9 }
  0x52   : > { %1104 = vrot.lane.b32.xlu1 %v2582_v59, %s2377_s11 }
  0x53   : > { %1102 = vrot.lane.b32.xlu0 %v2576_v58, %s2377_s11 }
  0x56   : > { %957 = vrot.lane.b32.xlu1 %v2593_v61, %s2376_s9 }
  0x57   : > { %955 = vrot.lane.b32.xlu0 %v2587_v60, %s2376_s9 }
  0x5a   : > { %1108 = vrot.lane.b32.xlu1 %v2593_v61, %s2377_s11 }
  0x5b   : > { %1106 = vrot.lane.b32.xlu0 %v2587_v60, %s2377_s11 }
  0x5f   : > { %959 = vrot.lane.b32.xlu0 %v2599_v62, %s2376_s9 }
  0x63   : > { %1110 = vrot.lane.b32.xlu0 %v2599_v62, %s2377_s11 }
  0x67   : > { %963 = vrot.lane.b32.xlu0 %v2611_v0, %s2376_s9 }
  0x6b   : > { %1116 = vrot.lane.b32.xlu0 %v2618_v1, %s2377_s11 }
  0x6f   : > { %1255 = vrot.lane.b32.xlu0 %v2582_v59, %s2378_s12 }
  0x73   : > { %1404 = vrot.lane.b32.xlu0 %v2576_v58, %s2379_s14 }
  0x9b   : > { %v308_v2 = vpop.permute.xlu0 %307 }
  0xa0   : > { %v313_v8 = vpop.permute.xlu0 %312  ;;  %v2700_v28 = vpop.permute.xlu1 %535 }
  0xa4   : > { %v534_v16 = vpop.permute.xlu0 %533  ;;  %v2708_v30 = vpop.permute.xlu1 %539 }
  0xa5   : > { %2164 = vmatprep.mubr.msk.f32.mxu0 %vm557_vm2, %v534_v16 }
  0xa8   : > { %v2657_v17 = vpop.permute.xlu0 %537  ;;  %v2715_v32 = vpop.permute.xlu1 %543 }
  0xac   : > { %v2659_v18 = vpop.permute.xlu0 %541  ;;  %v2724_v34 = vpop.permute.xlu1 %547 }
  0xb0   : > { %v2661_v19 = vpop.permute.xlu0 %545  ;;  %v803_v36 = vpop.permute.xlu1 %802 }
  0xb4   : > { %v801_v20 = vpop.permute.xlu0 %800  ;;  %v807_v38 = vpop.permute.xlu1 %806 }
  0xb8   : > { %v805_v27 = vpop.permute.xlu0 %804  ;;  %v811_v40 = vpop.permute.xlu1 %810 }
  0xbc   : > { %v809_v29 = vpop.permute.xlu0 %808  ;;  %v813_v42 = vpop.permute.xlu1 %812 }
  0xc0   : > { %v2713_v31 = vpop.permute.xlu0 %814  ;;  %v2745_v44 = vpop.permute.xlu1 %951 }
  0xc4   : > { %v2720_v33 = vpop.permute.xlu0 %953  ;;  %v1105_v46 = vpop.permute.xlu1 %1104 }
  0xc8   : > { %v1103_v35 = vpop.permute.xlu0 %1102  ;;  %v2753_v48 = vpop.permute.xlu1 %957 }
  0xcc   : > { %v2733_v37 = vpop.permute.xlu0 %955  ;;  %v1109_v50 = vpop.permute.xlu1 %1108 }
  0xd0   : > { %v2738_v39 = vpop.permute.xlu0 %1106 }
  0xd4   : > { %v2741_v41 = vpop.permute.xlu0 %959 }
  0xd8   : > { %v1111_v43 = vpop.permute.xlu0 %1110 }
  0xdc   : > { %v2748_v45 = vpop.permute.xlu0 %963 }
  0xe0   : > { %v2751_v47 = vpop.permute.xlu0 %1116 }
  0xe4   : > { %v2755_v49 = vpop.permute.xlu0 %1255 }
  0xe8   : > { %v2757_v51 = vpop.permute.xlu0 %1404 }
  0xec   : > { %v395_v3 = vpop.f32.mrf.mxu0 }
  0xed   : > { %v396_v4 = vadd.f32 %v395_v3, %v308_v2 }
  0xee   : > { %v397_v5 = vpop.f32.mrf.mxu0 }
  0xef   : > { %v398_v6 = vadd.f32 %v397_v5, %v308_v2  ;;  %v406_v10 = vmax.f32 %v396_v4, 0.0 }
  0xf0   : > { %v401_v7 = vpop.f32.mrf.mxu0 }
  0xf1   : > { %v407_v9 = vmax.f32 %v398_v6, 0.0  ;;  %v402_v11 = vadd.f32 %v401_v7, %v313_v8 }
  0xf2   : > { %v403_v12 = vpop.f32.mrf.mxu0 }
  0xf3   : > { %v404_v13 = vadd.f32 %v403_v12, %v313_v8  ;;  %506 = vmatprep.mubr.f32.mxu1 %v407_v9  ;;  %v408_v15 = vmax.f32 %v402_v11, 0.0 }
  0xf4   : > { %507 = vmatmul.mubr.f32.vlgmr.msra.gmra.mxu1 %v406_v10 }
  0xf5   : > { %v409_v14 = vmax.f32 %v404_v13, 0.0 }
  0xf7   : > { %511 = vmatprep.mubr.f32.mxu1 %v409_v14 }
  0xf8   : > { %512 = vmatmul.mubr.f32.gmra.mxu1 %v408_v15 }
  0xf9   : > { %2196 = vmatprep.mubr.msk.f32.mxu1 %vm557_vm2, %v801_v20  ;;  %v1706_v20 = vld [vmem:[%s3012_s4 + $0x8] sm:$0xff] }
 0x1b4   : > { %v2064_v21 = vpop.f32.mrf.mxu1 }
 0x1b6   : > { %v2065_v22 = vpop.f32.mrf.mxu1 }
 0x1b7   : > { %v2665_v23 = vadd.f32 %v2065_v22, %v2064_v21 }
 0x1b8   : > { %v2067_v24 = vpop.f32.mrf.mxu1 }
 0x1b9   : > { %551 = vrot.lane.b32.xlu1 %v2665_v23, %s2380_s13 }
 0x1ba   : > { %v2068_v25 = vpop.f32.mrf.mxu1 }
 0x1bb   : > { %v2668_v26 = vadd.f32 %v2068_v25, %v2067_v24 }
 0x1bd   : > { %818 = vrot.lane.b32.xlu0 %v2668_v26, %s2381_s15  ;;  %816 = vrot.lane.b32.xlu1 %v2665_v23, %s2381_s15 }
 0x1c1   : > { %1257 = vrot.lane.b32.xlu0 %v2587_v60, %s2378_s12  ;;  %967 = vrot.lane.b32.xlu1 %v2665_v23, %s2382_s16 }
 0x1c5   : > { %1408 = vrot.lane.b32.xlu0 %v2587_v60, %s2379_s14  ;;  %1118 = vrot.lane.b32.xlu1 %v2665_v23, %s2383_s17 }
 0x1c9   : > { %969 = vrot.lane.b32.xlu0 %v2668_v26, %s2382_s16  ;;  %553 = vrot.lane.b32.xlu1 %v2668_v26, %s2380_s13 }
 0x1cd   : > { %1120 = vrot.lane.b32.xlu0 %v2668_v26, %s2383_s17  ;;  %961 = vrot.lane.b32.xlu1 %v2605_v63, %s2376_s9 }
 0x1d1   : > { %1261 = vrot.lane.b32.xlu0 %v2599_v62, %s2378_s12  ;;  %1112 = vrot.lane.b32.xlu1 %v2605_v63, %s2377_s11 }
 0x1d5   : > { %1412 = vrot.lane.b32.xlu0 %v2599_v62, %s2379_s14  ;;  %965 = vrot.lane.b32.xlu1 %v2618_v1, %s2376_s9 }
 0x1d9   : > { %1271 = vrot.lane.b32.xlu0 %v2668_v26, %s2384_s18  ;;  %1114 = vrot.lane.b32.xlu1 %v2611_v0, %s2377_s11 }
 0x1dd   : > { %1422 = vrot.lane.b32.xlu0 %v2668_v26, %s2385_s19  ;;  %1269 = vrot.lane.b32.xlu1 %v2665_v23, %s2384_s18 }
 0x1e1   : > { %1265 = vrot.lane.b32.xlu0 %v2611_v0, %s2378_s12  ;;  %1253 = vrot.lane.b32.xlu1 %v2576_v58, %s2378_s12 }
 0x1e5   : > { %1418 = vrot.lane.b32.xlu0 %v2618_v1, %s2379_s14  ;;  %1420 = vrot.lane.b32.xlu1 %v2665_v23, %s2385_s19 }
 0x1e9   : > { %1573 = vrot.lane.b32.xlu0 %v2668_v26, %s2386_s20  ;;  %1406 = vrot.lane.b32.xlu1 %v2582_v59, %s2379_s14 }
 0x1ed   : > { %1716 = vrot.lane.b32.xlu0 %v2668_v26, %s2387_s21  ;;  %1259 = vrot.lane.b32.xlu1 %v2593_v61, %s2378_s12 }
 0x1f1   : > { %1410 = vrot.lane.b32.xlu1 %v2593_v61, %s2379_s14  ;;  %1557 = vrot.lane.b32.xlu0 %v2582_v59, %s2388_s26 }
 0x1f5   : > { %1263 = vrot.lane.b32.xlu1 %v2605_v63, %s2378_s12  ;;  %1559 = vrot.lane.b32.xlu0 %v2587_v60, %s2388_s26 }
 0x1f9   : > { %1414 = vrot.lane.b32.xlu1 %v2605_v63, %s2379_s14  ;;  %1563 = vrot.lane.b32.xlu0 %v2599_v62, %s2388_s26 }
 0x1fd   : > { %1267 = vrot.lane.b32.xlu1 %v2618_v1, %s2378_s12  ;;  %1567 = vrot.lane.b32.xlu0 %v2611_v0, %s2388_s26 }
 0x201   : > { %1416 = vrot.lane.b32.xlu1 %v2611_v0, %s2379_s14 }
 0x205   : > { %1571 = vrot.lane.b32.xlu1 %v2665_v23, %s2386_s20 }
 0x209   : > { %1555 = vrot.lane.b32.xlu1 %v2576_v58, %s2388_s26 }
 0x20d   : > { %1714 = vrot.lane.b32.xlu1 %v2665_v23, %s2387_s21 }
 0x211   : > { %1561 = vrot.lane.b32.xlu1 %v2593_v61, %s2388_s26 }
 0x215   : > { %1565 = vrot.lane.b32.xlu1 %v2605_v63, %s2388_s26 }
 0x219   : > { %1569 = vrot.lane.b32.xlu1 %v2618_v1, %s2388_s26 }
 0x22b   : > { %v552_v52 = vpop.permute.xlu1 %551 }
 0x22f   : > { %v819_v53 = vpop.permute.xlu0 %818  ;;  %v817_v54 = vpop.permute.xlu1 %816 }
 0x230   : > { %2192 = vmatprep.subr.mxu1 %v819_v53 }
 0x231   : > { %2193 = vmatpush3.msra.mxu1 %v819_v53 }
 0x232   : > { %2194 = vmatprep.subr.mxu1 %v817_v54 }
 0x233   : > { %v2759_v55 = vpop.permute.xlu0 %1257  ;;  %2195 = vmatpush3.msra.mxu1 %v817_v54  ;;  %v968_v56 = vpop.permute.xlu1 %967 }
 0x234   : > { %2197 = vmatmul.mubr.msk.f32.vlgmr.msra.gmra.mxu1 %vm557_vm2, %v803_v36 }
 0x235   : > { %2199 = vmatprep.mubr.msk.f32.mxu1 %vm557_vm2, %v805_v27  ;;  %v1708_v27 = vld [vmem:[%s3012_s4 + $0x28] sm:$0xff] }
 0x237   : > { %v2763_v57 = vpop.permute.xlu0 %1408  ;;  %v1119_v2 = vpop.permute.xlu1 %1118 }
 0x238   : > { %2200 = vmatmul.mubr.msk.f32.gmra.mxu1 %vm557_vm2, %v807_v38 }
 0x239   : > { %2202 = vmatprep.mubr.msk.f32.mxu1 %vm557_vm2, %v809_v29 }
 0x23b   : > { %v970_v3 = vpop.permute.xlu0 %969  ;;  %v554_v4 = vpop.permute.xlu1 %553 }
 0x23c   : > { %2160 = vmatprep.subr.mxu0 %v554_v4  ;;  %2203 = vmatmul.mubr.msk.f32.gmra.mxu1 %vm557_vm2, %v811_v40 }
 0x23d   : > { %2161 = vmatpush3.msra.mxu0 %v554_v4  ;;  %2205 = vmatprep.mubr.msk.f32.mxu1 %vm557_vm2, %v813_v42 }
 0x23e   : > { %2162 = vmatprep.subr.mxu0 %v552_v52 }
 0x23f   : > { %v1121_v5 = vpop.permute.xlu0 %1120  ;;  %2163 = vmatpush3.msra.mxu0 %v552_v52  ;;  %v2769_v6 = vpop.permute.xlu1 %961 }
 0x240   : > { %2165 = vmatmul.mubr.msk.f32.vlgmr.msra.gmra.mxu0 %vm557_vm2, %v2700_v28  ;;  %2176 = vmatprep.subr.mxu0 %v2668_v26 }
 0x241   : > { %2206 = vmatmul.mubr.msk.f32.gmra.mxu1 %vm557_vm2, %v2713_v31  ;;  %2224 = vmatprep.subr.mxu1 %v1121_v5  ;;  %v1710_v31 = vld [vmem:[%s3012_s4 + $0x48] sm:$0xff] }
 0x242   : > { %2167 = vmatprep.mubr.msk.f32.mxu0 %vm557_vm2, %v2657_v17  ;;  %2177 = vmatpush3.msra.mxu0 %v2668_v26  ;;  %v1707_v26 = vld [vmem:[%s3012_s4 + $0x18] sm:$0xff] }
 0x243   : > { %2225 = vmatpush3.msra.mxu1 %v1121_v5  ;;  %2228 = vmatprep.mubr.msk.f32.mxu1 %vm557_vm2, %v1103_v35  ;;  %v2780_v7 = vpop.permute.xlu0 %1261  ;;  %v1113_v8 = vpop.permute.xlu1 %1112  ;;  %v1712_v35 = vld [vmem:[%s3012_s4 + $0x68] sm:$0xff] }
 0x244   : > { %2178 = vmatprep.subr.mxu0 %v2665_v23  ;;  %2226 = vmatprep.subr.mxu1 %v1119_v2 }
 0x245   : > { %2179 = vmatpush3.msra.mxu0 %v2665_v23  ;;  %2227 = vmatpush3.msra.mxu1 %v1119_v2 }
 0x246   : > { %2168 = vmatmul.mubr.msk.f32.gmra.mxu0 %vm557_vm2, %v2708_v30  ;;  %2208 = vmatprep.subr.mxu0 %v970_v3  ;;  %v1709_v30 = vld [vmem:[%s3012_s4 + $0x38] sm:$0xff] }
 0x247   : > { %2229 = vmatmul.mubr.msk.f32.vlgmr.msra.gmra.mxu1 %vm557_vm2, %v1105_v46  ;;  %2170 = vmatprep.mubr.msk.f32.mxu0 %vm557_vm2, %v2659_v18  ;;  %v1413_v9 = vpop.permute.xlu0 %1412  ;;  %v966_v10 = vpop.permute.xlu1 %965 }
 0x248   : > { %2231 = vmatprep.mubr.msk.f32.mxu1 %vm557_vm2, %v2738_v39 }
 0x24a   : > { %2171 = vmatmul.mubr.msk.f32.gmra.mxu0 %vm557_vm2, %v2715_v32 }
 0x24b   : > { %2232 = vmatmul.mubr.msk.f32.gmra.mxu1 %vm557_vm2, %v1109_v50  ;;  %2173 = vmatprep.mubr.msk.f32.mxu0 %vm557_vm2, %v2661_v19  ;;  %v1272_v11 = vpop.permute.xlu0 %1271  ;;  %v1115_v12 = vpop.permute.xlu1 %1114 }
 0x24c   : > { %2234 = vmatprep.mubr.msk.f32.mxu1 %vm557_vm2, %v1111_v43 }
 0x24e   : > { %2174 = vmatmul.mubr.msk.f32.gmra.mxu0 %vm557_vm2, %v2724_v34 }
 0x24f   : > { %2235 = vmatmul.mubr.msk.f32.gmra.mxu1 %vm557_vm2, %v1113_v8  ;;  %v1423_v13 = vpop.permute.xlu0 %1422  ;;  %2180 = vmatprep.mubr.msk.f32.mxu0 %vm557_vm2, %v2576_v58  ;;  %v1270_v14 = vpop.permute.xlu1 %1269 }
 0x250   : > { %2237 = vmatprep.mubr.msk.f32.mxu1 %vm557_vm2, %v1115_v12  ;;  %2256 = vmatprep.subr.mxu1 %v1423_v13 }
 0x251   : > { %2257 = vmatpush3.msra.mxu1 %v1423_v13 }
 0x252   : > { %2181 = vmatmul.mubr.msk.f32.vlgmr.msra.gmra.mxu0 %vm557_vm2, %v2582_v59 }
 0x253   : > { %2209 = vmatpush3.msra.mxu0 %v970_v3  ;;  %2238 = vmatmul.mubr.msk.f32.gmra.mxu1 %vm557_vm2, %v2751_v47  ;;  %v1266_v15 = vpop.permute.xlu0 %1265  ;;  %v1254_v16 = vpop.permute.xlu1 %1253 }
 0x254   : > { %2210 = vmatprep.subr.mxu0 %v968_v56  ;;  %2260 = vmatprep.mubr.msk.f32.mxu1 %vm557_vm2, %v2757_v51 }
 0x255   : > { %2211 = vmatpush3.msra.mxu0 %v968_v56  ;;  %2183 = vmatprep.mubr.msk.f32.mxu0 %vm557_vm2, %v2587_v60 }
 0x256   : > { %2240 = vmatprep.subr.mxu0 %v1272_v11  ;;  %2184 = vmatmul.mubr.msk.f32.gmra.mxu0 %vm557_vm2, %v2593_v61 }
 0x257   : > { %v1419_v58 = vpop.permute.xlu0 %1418  ;;  %2186 = vmatprep.mubr.msk.f32.mxu0 %vm557_vm2, %v2599_v62  ;;  %v1421_v59 = vpop.permute.xlu1 %1420 }
 0x258   : > { %2258 = vmatprep.subr.mxu1 %v1421_v59 }
 0x259   : > { %2259 = vmatpush3.msra.mxu1 %v1421_v59 }
 0x25a   : > { %2187 = vmatmul.mubr.msk.f32.gmra.mxu0 %vm557_vm2, %v2605_v63 }
 0x25b   : > { %v1574_v17 = vpop.permute.xlu0 %1573  ;;  %2189 = vmatprep.mubr.msk.f32.mxu0 %vm557_vm2, %v2611_v0  ;;  %v1407_v18 = vpop.permute.xlu1 %1406 }
 0x25c   : > { %2261 = vmatmul.mubr.msk.f32.vlgmr.msra.gmra.mxu1 %vm557_vm2, %v1407_v18 }
 0x25d   : > { %2263 = vmatprep.mubr.msk.f32.mxu1 %vm557_vm2, %v2763_v57 }
 0x25e   : > { %2190 = vmatmul.mubr.msk.f32.gmra.mxu0 %vm557_vm2, %v2618_v1 }
 0x25f   : > { %2212 = vmatprep.mubr.msk.f32.mxu0 %vm557_vm2, %v2745_v44  ;;  %v1717_v60 = vpop.permute.xlu0 %1716  ;;  %v1260_v61 = vpop.permute.xlu1 %1259 }
 0x260   : > { %2288 = vmatprep.subr.mxu1 %v1717_v60 }
 0x261   : > { %2289 = vmatpush3.msra.mxu1 %v1717_v60 }
 0x262   : > { %2213 = vmatmul.mubr.msk.f32.vlgmr.msra.gmra.mxu0 %vm557_vm2, %v2720_v33  ;;  %v1711_v33 = vld [vmem:[%s3012_s4 + $0x58] sm:$0xff] }
 0x263   : > { %2241 = vmatpush3.msra.mxu0 %v1272_v11  ;;  %2215 = vmatprep.mubr.msk.f32.mxu0 %vm557_vm2, %v2733_v37  ;;  %v1411_v62 = vpop.permute.xlu1 %1410  ;;  %v1558_v21 = vpop.permute.xlu0 %1557  ;;  %v1713_v37 = vld [vmem:[%s3012_s4 + $0x78] sm:$0xff] }
 0x264   : > { %2242 = vmatprep.subr.mxu0 %v1270_v14  ;;  %2264 = vmatmul.mubr.msk.f32.gmra.mxu1 %vm557_vm2, %v1411_v62 }
 0x265   : > { %2243 = vmatpush3.msra.mxu0 %v1270_v14  ;;  %2266 = vmatprep.mubr.msk.f32.mxu1 %vm557_vm2, %v1413_v9 }
 0x266   : > { %2272 = vmatprep.subr.mxu0 %v1574_v17  ;;  %2216 = vmatmul.mubr.msk.f32.gmra.mxu0 %vm557_vm2, %v2753_v48 }
 0x267   : > { %2218 = vmatprep.mubr.msk.f32.mxu0 %vm557_vm2, %v2741_v41  ;;  %v1264_v63 = vpop.permute.xlu1 %1263  ;;  %v1560_v24 = vpop.permute.xlu0 %1559 }
 0x26a   : > { %2219 = vmatmul.mubr.msk.f32.gmra.mxu0 %vm557_vm2, %v2769_v6 }
 0x26b   : > { %2221 = vmatprep.mubr.msk.f32.mxu0 %vm557_vm2, %v2748_v45  ;;  %v1415_v0 = vpop.permute.xlu1 %1414  ;;  %v1564_v28 = vpop.permute.xlu0 %1563 }
 0x26c   : > { %2267 = vmatmul.mubr.msk.f32.gmra.mxu1 %vm557_vm2, %v1415_v0 }
 0x26e   : > { %2222 = vmatmul.mubr.msk.f32.gmra.mxu0 %vm557_vm2, %v966_v10 }
 0x26f   : > { %2244 = vmatprep.mubr.msk.f32.mxu0 %vm557_vm2, %v1254_v16  ;;  %v1268_v1 = vpop.permute.xlu1 %1267  ;;  %v1568_v34 = vpop.permute.xlu0 %1567 }
 0x272   : > { %2245 = vmatmul.mubr.msk.f32.vlgmr.msra.gmra.mxu0 %vm557_vm2, %v2755_v49 }
 0x273   : > { %2273 = vmatpush3.msra.mxu0 %v1574_v17  ;;  %2247 = vmatprep.mubr.msk.f32.mxu0 %vm557_vm2, %v2759_v55  ;;  %v1417_v19 = vpop.permute.xlu1 %1416 }
 0x274   : > { %2269 = vmatprep.mubr.msk.f32.mxu1 %vm557_vm2, %v1417_v19 }
 0x275   : > { %2270 = vmatmul.mubr.msk.f32.gmra.mxu1 %vm557_vm2, %v1419_v58 }
 0x276   : > { %2248 = vmatmul.mubr.msk.f32.gmra.mxu0 %vm557_vm2, %v1260_v61  ;;  %2292 = vmatprep.mubr.msk.f32.mxu1 %vm557_vm2, %v1706_v20 }
 0x277   : > { %2250 = vmatprep.mubr.msk.f32.mxu0 %vm557_vm2, %v2780_v7  ;;  %v1572_v22 = vpop.permute.xlu1 %1571 }
 0x278   : > { %2274 = vmatprep.subr.mxu0 %v1572_v22 }
 0x279   : > { %2275 = vmatpush3.msra.mxu0 %v1572_v22 }
 0x27a   : > { %2251 = vmatmul.mubr.msk.f32.gmra.mxu0 %vm557_vm2, %v1264_v63 }
 0x27b   : > { %2253 = vmatprep.mubr.msk.f32.mxu0 %vm557_vm2, %v1266_v15  ;;  %v1556_v23 = vpop.permute.xlu1 %1555 }
 0x27e   : > { %2254 = vmatmul.mubr.msk.f32.gmra.mxu0 %vm557_vm2, %v1268_v1 }
 0x27f   : > { %2276 = vmatprep.mubr.msk.f32.mxu0 %vm557_vm2, %v1556_v23  ;;  %v1715_v25 = vpop.permute.xlu1 %1714 }
 0x280   : > { %2290 = vmatprep.subr.mxu1 %v1715_v25 }
 0x281   : > { %2291 = vmatpush3.msra.mxu1 %v1715_v25 }
 0x282   : > { %2277 = vmatmul.mubr.msk.f32.vlgmr.msra.gmra.mxu0 %vm557_vm2, %v1558_v21  ;;  %2293 = vmatmul.mubr.msk.f32.vlgmr.msra.gmra.mxu1 %vm557_vm2, %v1707_v26 }
 0x283   : > { %2279 = vmatprep.mubr.msk.f32.mxu0 %vm557_vm2, %v1560_v24  ;;  %v1562_v29 = vpop.permute.xlu1 %1561  ;;  %2295 = vmatprep.mubr.msk.f32.mxu1 %vm557_vm2, %v1708_v27 }
 0x286   : > { %2280 = vmatmul.mubr.msk.f32.gmra.mxu0 %vm557_vm2, %v1562_v29  ;;  %2296 = vmatmul.mubr.msk.f32.gmra.mxu1 %vm557_vm2, %v1709_v30 }
 0x287   : > { %2282 = vmatprep.mubr.msk.f32.mxu0 %vm557_vm2, %v1564_v28  ;;  %v1566_v32 = vpop.permute.xlu1 %1565  ;;  %2298 = vmatprep.mubr.msk.f32.mxu1 %vm557_vm2, %v1710_v31 }
 0x28a   : > { %2283 = vmatmul.mubr.msk.f32.gmra.mxu0 %vm557_vm2, %v1566_v32  ;;  %2299 = vmatmul.mubr.msk.f32.gmra.mxu1 %vm557_vm2, %v1711_v33 }
 0x28b   : > { %2285 = vmatprep.mubr.msk.f32.mxu0 %vm557_vm2, %v1568_v34  ;;  %v1570_v36 = vpop.permute.xlu1 %1569  ;;  %2301 = vmatprep.mubr.msk.f32.mxu1 %vm557_vm2, %v1712_v35 }
 0x28e   : > { %2286 = vmatmul.mubr.msk.f32.gmra.mxu0 %vm557_vm2, %v1570_v36  ;;  %2302 = vmatmul.mubr.msk.f32.gmra.mxu1 %vm557_vm2, %v1713_v37 }
 0x2f4   : > { %v2198_v38 = vpop.f32.mrf.mxu1 }
 0x2f6   : > { %v904_v39 = vpop.f32.mrf.mxu1 }
 0x2f8   : > { %v2201_v40 = vpop.f32.mrf.mxu1 }
 0x2fa   : > { %v914_v41 = vpop.f32.mrf.mxu1 }
 0x2fc   : > { %v2895_v42 = vpop.f32.mrf.mxu1 }
 0x2fe   : > { %v2897_v43 = vpop.f32.mrf.mxu1 }
 0x300   : > { %v2166_v44 = vpop.f32.mrf.mxu0 }
 0x301   : > { %v2899_v46 = vpop.f32.mrf.mxu1 }
 0x302   : > { %v640_v45 = vpop.f32.mrf.mxu0 }
 0x303   : > { %v2901_v48 = vpop.f32.mrf.mxu1 }
 0x306   : > { %v2169_v47 = vpop.f32.mrf.mxu0 }
 0x307   : > { %v2230_v51 = vpop.f32.mrf.mxu1 }
 0x308   : > { %v650_v49 = vpop.f32.mrf.mxu0 }
 0x309   : > { %v1206_v54 = vpop.f32.mrf.mxu1 }
 0x30a   : > { %v2172_v50 = vpop.f32.mrf.mxu0 }
 0x30b   : > { %v2233_v57 = vpop.f32.mrf.mxu1 }
 0x30c   : > { %v660_v52 = vpop.f32.mrf.mxu0 }
 0x30d   : > { %v2903_v4 = vpop.f32.mrf.mxu1 }
 0x30e   : > { %v2175_v53 = vpop.f32.mrf.mxu0 }
 0x30f   : > { %v2905_v7 = vpop.f32.mrf.mxu1 }
 0x310   : > { %v670_v55 = vpop.f32.mrf.mxu0 }
 0x311   : > { %v2907_v10 = vpop.f32.mrf.mxu1 }
 0x312   : > { %v2182_v56 = vpop.f32.mrf.mxu0 }
 0x313   : > { %v2909_v13 = vpop.f32.mrf.mxu1  ;;  %v767_v0 = vadd.f32 %v2182_v56, %v2166_v44 }
 0x314   : > { %v761_v2 = vpop.f32.mrf.mxu0 }
 0x315   : > { %v2911_v16 = vpop.f32.mrf.mxu1  ;;  %v762_v19 = vadd.f32 %v761_v2, %v640_v45  ;;  %v944_v23 = vadd.f32 %v2198_v38, %v767_v0 }
 0x316   : > { %v2185_v3 = vpop.f32.mrf.mxu0 }
 0x317   : > { %v777_v22 = vadd.f32 %v2185_v3, %v2169_v47  ;;  %v943_v28 = vadd.f32 %v904_v39, %v762_v19 }
 0x318   : > { %v771_v5 = vpop.f32.mrf.mxu0 }
 0x319   : > { %v772_v26 = vadd.f32 %v771_v5, %v650_v49  ;;  %v946_v32 = vadd.f32 %v2201_v40, %v777_v22 }
 0x31a   : > { %v2188_v6 = vpop.f32.mrf.mxu0 }
 0x31b   : > { %v787_v29 = vadd.f32 %v2188_v6, %v2172_v50  ;;  %v945_v37 = vadd.f32 %v914_v41, %v772_v26  ;;  %v1860_v26 = vld [vmem:[%s3013_s5 + $0x18] sm:$0xff] }
 0x31c   : > { %v781_v8 = vpop.f32.mrf.mxu0  ;;  %v2262_v59 = vpop.f32.mrf.mxu1 }
 0x31d   : > { %v782_v33 = vadd.f32 %v781_v8, %v660_v52  ;;  %v948_v39 = vadd.f32 %v2895_v42, %v787_v29 }
 0x31e   : > { %v2191_v9 = vpop.f32.mrf.mxu0  ;;  %v1508_v60 = vpop.f32.mrf.mxu1 }
 0x31f   : > { %v797_v38 = vadd.f32 %v2191_v9, %v2175_v53  ;;  %v947_v41 = vadd.f32 %v2897_v43, %v782_v33 }
 0x320   : > { %v791_v11 = vpop.f32.mrf.mxu0 }
 0x321   : > { %v792_v52 = vadd.f32 %v791_v11, %v670_v55  ;;  %v950_v42 = vadd.f32 %v2899_v46, %v797_v38 }
 0x322   : > { %v2214_v12 = vpop.f32.mrf.mxu0 }
 0x323   : > { %v1095_v27 = vadd.f32 %v2214_v12, %v944_v23  ;;  %v949_v43 = vadd.f32 %v2901_v48, %v792_v52 }
 0x324   : > { %v1055_v14 = vpop.f32.mrf.mxu0  ;;  %v2913_v62 = vpop.f32.mrf.mxu1 }
 0x325   : > { %v1094_v31 = vadd.f32 %v1055_v14, %v943_v28  ;;  %v1246_v44 = vadd.f32 %v2230_v51, %v1095_v27 }
 0x326   : > { %v2217_v15 = vpop.f32.mrf.mxu0  ;;  %v2915_v20 = vpop.f32.mrf.mxu1 }
 0x327   : > { %v1097_v36 = vadd.f32 %v2217_v15, %v946_v32  ;;  %v1245_v50 = vadd.f32 %v1206_v54, %v1094_v31 }
 0x328   : > { %v1065_v58 = vpop.f32.mrf.mxu0 }
 0x329   : > { %v1096_v47 = vadd.f32 %v1065_v58, %v945_v37  ;;  %v1248_v3 = vadd.f32 %v2233_v57, %v1097_v36 }
 0x32a   : > { %v2220_v17 = vpop.f32.mrf.mxu0 }
 0x32b   : > { %v1099_v56 = vadd.f32 %v2220_v17, %v948_v39  ;;  %v1247_v54 = vadd.f32 %v2903_v4, %v1096_v47  ;;  %v1858_v4 = vld [vmem:[%s3013_s5 + $0x8] sm:$0xff] }
 0x32c   : > { %v1075_v18 = vpop.f32.mrf.mxu0  ;;  %v2917_v24 = vpop.f32.mrf.mxu1  ;;  %v1862_v39 = vld [vmem:[%s3013_s5 + $0x28] sm:$0xff] }
 0x32d   : > { %v1098_v53 = vadd.f32 %v1075_v18, %v947_v41  ;;  %v1250_v57 = vadd.f32 %v2905_v7, %v1099_v56  ;;  %v1861_v56 = vld [vmem:[%s3013_s5 + $0x20] sm:$0xff] }
 0x32e   : > { %v2223_v61 = vpop.f32.mrf.mxu0  ;;  %v2919_v34 = vpop.f32.mrf.mxu1 }
 0x32f   : > { %v1101_v9 = vadd.f32 %v2223_v61, %v950_v42  ;;  %v1249_v18 = vadd.f32 %v2907_v10, %v1098_v53 }
 0x330   : > { %v1085_v63 = vpop.f32.mrf.mxu0 }
 0x331   : > { %v1100_v17 = vadd.f32 %v1085_v63, %v949_v43  ;;  %v1252_v19 = vadd.f32 %v2909_v13, %v1101_v9  ;;  %v1863_v9 = vld [vmem:[%s3013_s5 + $0x30] sm:$0xff] }
 0x332   : > { %v2246_v1 = vpop.f32.mrf.mxu0 }
 0x333   : > { %v1397_v49 = vadd.f32 %v2246_v1, %v1246_v44  ;;  %v1251_v13 = vadd.f32 %v2911_v16, %v1100_v17  ;;  %v1859_v16 = vld [vmem:[%s3013_s5 + $0x10] sm:$0xff] }
 0x334   : > { %v1357_v21 = vpop.f32.mrf.mxu0 }
 0x335   : > { %v2928_v45 = vpop.f32.mrf.mxu1  ;;  %v1396_v2 = vadd.f32 %v1357_v21, %v1245_v50  ;;  %v1548_v55 = vadd.f32 %v2262_v59, %v1397_v49 }
 0x336   : > { %v2249_v25 = vpop.f32.mrf.mxu0 }
 0x337   : > { %v2938_v5 = vpop.f32.mrf.mxu1  ;;  %v1399_v8 = vadd.f32 %v2249_v25, %v1248_v3  ;;  %v1547_v58 = vadd.f32 %v1508_v60, %v1396_v2  ;;  %v1857_v60 = vld [vmem:[%s3013_s5] sm:$0xff] }
 0x338   : > { %v1367_v30 = vpop.f32.mrf.mxu0 }
 0x339   : > { %v1398_v14 = vadd.f32 %v1367_v30, %v1247_v54  ;;  %v1550_v7 = vadd.f32 %v2913_v62, %v1399_v8 }
 0x33a   : > { %v2252_v35 = vpop.f32.mrf.mxu0 }
 0x33b   : > { %v1401_v46 = vadd.f32 %v2252_v35, %v1250_v57  ;;  %v1549_v62 = vadd.f32 %v2915_v20, %v1398_v14 }
 0x33c   : > { %v1377_v40 = vpop.f32.mrf.mxu0 }
 0x33d   : > { %v1400_v1 = vadd.f32 %v1377_v40, %v1249_v18  ;;  %v1552_v27 = vadd.f32 %v2917_v24, %v1401_v46 }
 0x33e   : > { %v2255_v51 = vpop.f32.mrf.mxu0 }
 0x33f   : > { %v1403_v29 = vadd.f32 %v2255_v51, %v1252_v19  ;;  %v1551_v20 = vadd.f32 %v2919_v34, %v1400_v1 }
 0x340   : > { %v1387_v6 = vpop.f32.mrf.mxu0 }
 0x341   : > { %v1402_v36 = vadd.f32 %v1387_v6, %v1251_v13  ;;  %v1554_v50 = vadd.f32 %v2928_v45, %v1403_v29  ;;  %v1864_v45 = vld [vmem:[%s3013_s5 + $0x38] sm:$0xff] }
 0x342   : > { %v2278_v11 = vpop.f32.mrf.mxu0  ;;  %v2294_v12 = vpop.f32.mrf.mxu1 }
 0x343   : > { %v1699_v15 = vadd.f32 %v2278_v11, %v1548_v55  ;;  %v1553_v53 = vadd.f32 %v2938_v5, %v1402_v36 }
 0x344   : > { %v1659_v0 = vpop.f32.mrf.mxu0  ;;  %v1810_v59 = vpop.f32.mrf.mxu1 }
 0x345   : > { %v1698_v61 = vadd.f32 %v1659_v0, %v1547_v58  ;;  %v1850_v48 = vadd.f32 %v2294_v12, %v1699_v15 }
 0x346   : > { %v2281_v10 = vpop.f32.mrf.mxu0  ;;  %v2297_v63 = vpop.f32.mrf.mxu1 }
 0x347   : > { %v1866_v21 = vadd.f32 %v1858_v4, %v1850_v48  ;;  %v1701_v22 = vadd.f32 %v2281_v10, %v1550_v7  ;;  %v1849_v23 = vadd.f32 %v1810_v59, %v1698_v61 }
 0x348   : > { %v1669_v25 = vpop.f32.mrf.mxu0  ;;  %v1820_v28 = vpop.f32.mrf.mxu1 }
 0x349   : > { %1875 = vst.msk [vmem:[%s2953_s24 + $0x8] sm:$0xff] %vm1873_vm3, %v1866_v21  ;;  %v1865_v30 = vadd.f32 %v1857_v60, %v1849_v23  ;;  %v1700_v31 = vadd.f32 %v1669_v25, %v1549_v62  ;;  %v1852_v32 = vadd.f32 %v2297_v63, %v1701_v22 }
 0x34a   : > { %v2284_v33 = vpop.f32.mrf.mxu0  ;;  %v2300_v35 = vpop.f32.mrf.mxu1 }
 0x34b   : > { %1874 = vst.msk [vmem:[%s2953_s24] sm:$0xff] %vm1873_vm3, %v1865_v30  ;;  %v1868_v24 = vadd.f32 %v1860_v26, %v1852_v32  ;;  %v1703_v37 = vadd.f32 %v2284_v33, %v1552_v27  ;;  %v1851_v44 = vadd.f32 %v1820_v28, %v1700_v31 }
 0x34c   : > { %v1679_v38 = vpop.f32.mrf.mxu0  ;;  %v1830_v40 = vpop.f32.mrf.mxu1 }
 0x34d   : > { %1877 = vst.msk [vmem:[%s2953_s24 + $0x18] sm:$0xff] %vm1873_vm3, %v1868_v24  ;;  %v1867_v47 = vadd.f32 %v1859_v16, %v1851_v44  ;;  %v1702_v49 = vadd.f32 %v1679_v38, %v1551_v20  ;;  %v1854_v34 = vadd.f32 %v2300_v35, %v1703_v37 }
 0x34e   : > { %v2287_v52 = vpop.f32.mrf.mxu0  ;;  %v2303_v41 = vpop.f32.mrf.mxu1 }
 0x34f   : > { %1876 = vst.msk [vmem:[%s2953_s24 + $0x10] sm:$0xff] %vm1873_vm3, %v1867_v47  ;;  %v1870_v51 = vadd.f32 %v1862_v39, %v1854_v34  ;;  %v1705_v2 = vadd.f32 %v2287_v52, %v1554_v50  ;;  %v1853_v3 = vadd.f32 %v1830_v40, %v1702_v49 }
 0x350   : > { %v1689_v42 = vpop.f32.mrf.mxu0  ;;  %v1840_v6 = vpop.f32.mrf.mxu1 }
 0x351   : > { %1879 = vst.msk [vmem:[%s2953_s24 + $0x28] sm:$0xff] %vm1873_vm3, %v1870_v51  ;;  %v1869_v8 = vadd.f32 %v1861_v56, %v1853_v3  ;;  %v1704_v54 = vadd.f32 %v1689_v42, %v1553_v53  ;;  %v1856_v55 = vadd.f32 %v2303_v41, %v1705_v2 }
 0x353   : > { %1878 = vst.msk [vmem:[%s2953_s24 + $0x20] sm:$0xff] %vm1873_vm3, %v1869_v8  ;;  %v1872_v43 = vadd.f32 %v1864_v45, %v1856_v55  ;;  %v1855_v57 = vadd.f32 %v1840_v6, %v1704_v54 }
 0x355   : > { %1881 = vst.msk [vmem:[%s2953_s24 + $0x38] sm:$0xff] %vm1873_vm3, %v1872_v43  ;;  %v1871_v5 = vadd.f32 %v1863_v9, %v1855_v57 }
 0x357   : > { %1880 = vst.msk [vmem:[%s2953_s24 + $0x30] sm:$0xff] %vm1873_vm3, %v1871_v5 }
 0x358 PF: > { %p13_p9 = scmp.ge.s32.totalorder %s2441_s25, 4   ;;  %s3016_s21 = smov %s2366_s22 }
 0x359   : > { %s3017_s22 = smov %s2450_s28  ;;  %s3018_s23 = smov %s2441_s25 }
 0x35a   :  { %15 = sbr.rel (!%p13_p9) target bundleno = 2 (0x2), region = 102 }

</bundles_post_ra>
